<compile_context>
chip_gen: v5e
topology: v5e:2x2
jax: 0.10.0
libtpu: 0.0.40
codegen_flags: <defaults>
</compile_context>

<pallas_src>
import functools

import jax
import jax.numpy as jnp
from jax.experimental import pallas as pl
from jax.experimental.pallas import tpu as pltpu


def _round_up(n, m):
    return ((n + m - 1) // m) * m


def _choose_block_b(B, F, target_bytes=4 * 1024 * 1024, max_bytes=8 * 1024 * 1024):
    """Pick a batch tile (rows) sized by VMEM bytes of the x tile, not row count."""
    f_pad = _round_up(F, 128)               # lane padding of the x tile in VMEM
    row_bytes = 4 * f_pad
    bb = max(128, (target_bytes // row_bytes) // 128 * 128)
    # No bigger than the (128-rounded) batch itself.
    bb = min(bb, _round_up(B, 128))
    # v7x: guarantee >= 2 grid steps so dimension_semantics=("parallel",) can
    # shard the batch axis across both TensorCores (no effect on v5e/v6e).
    if B >= 256:
        bb = min(bb, _round_up(pl.cdiv(B, 2), 128))
    # Cap per-buffer footprint so double-buffered x fits v7x's 64 MiB VMEM.
    bb = min(bb, max(128, (max_bytes // row_bytes) // 128 * 128))
    return bb


def _mlp_kernel(x_ref, w1_ref, b1_ref, w2_ref, b2_ref, w3_ref, b3_ref, o_ref):
    # Whole forward pass fused; MXU accumulates in f32 regardless of input dtype.
    x = x_ref[...]                                             # (bb, F)

    h1 = jnp.dot(x, w1_ref[...], preferred_element_type=jnp.float32) + b1_ref[...]
    h1 = jnp.maximum(h1, 0.0)

    h2 = jnp.dot(h1.astype(w2_ref.dtype), w2_ref[...],
                 preferred_element_type=jnp.float32) + b2_ref[...]
    h2 = jnp.maximum(h2, 0.0)

    out = jnp.dot(h2.astype(w3_ref.dtype), w3_ref[...],
                  preferred_element_type=jnp.float32) + b3_ref[...]   # (bb, 1)
    o_ref[...] = out.astype(o_ref.dtype)


@functools.partial(jax.jit, static_argnames=("block_b", "use_bf16"))
def regression_model_forward(x, params, block_b=None, use_bf16=False):
    """x: (B, F) float32 -> (B, 1) float32."""
    w1, b1, w2, b2, w3, b3 = params
    B, F = x.shape
    H1 = w1.shape[1]
    H2 = w2.shape[1]
    OUT = w3.shape[1]
    assert OUT == 1

    if block_b is None:
        bb = _choose_block_b(B, F)
    else:
        bb = max(128, min(_round_up(block_b, 128), _round_up(B, 128)))
    assert bb % 128 == 0

    grid_n = pl.cdiv(B, bb)                 # last block may be partial; no padding

    if use_bf16:
        # Opt-in: halves the binding HBM read of x; accumulation stays f32.
        x = x.astype(jnp.bfloat16)
        w1 = w1.astype(jnp.bfloat16)
        w2 = w2.astype(jnp.bfloat16)
        w3 = w3.astype(jnp.bfloat16)

    # Weights/biases are tiny; keep the full tensors resident for every grid step.
    full = lambda shape: pl.BlockSpec(shape, lambda i, _s=len(shape): (0,) * _s)

    flops = 2 * B * (F * H1 + H1 * H2 + H2 * OUT)
    bytes_accessed = (x.dtype.itemsize * B * F + 4 * B * OUT
                      + w1.nbytes + w2.nbytes + w3.nbytes
                      + b1.nbytes + b2.nbytes + b3.nbytes)

    out = pl.pallas_call(
        _mlp_kernel,
        out_shape=jax.ShapeDtypeStruct((B, OUT), jnp.float32),
        grid_spec=pltpu.PrefetchScalarGridSpec(
            num_scalar_prefetch=0,
            grid=(grid_n,),
            in_specs=[
                pl.BlockSpec((bb, F), lambda i: (i, 0)),   # x tile over batch
                full((F, H1)),
                full((1, H1)),
                full((H1, H2)),
                full((1, H2)),
                full((H2, OUT)),
                full((1, OUT)),
            ],
            out_specs=pl.BlockSpec((bb, OUT), lambda i: (i, 0)),
        ),
        compiler_params=pltpu.CompilerParams(
            # Batch grid axis is independent -> shard across v7x's 2 TensorCores.
            dimension_semantics=("parallel",),
            # Safe on v7x (64 MiB/TC); tile sizing keeps us well under this.
            vmem_limit_bytes=32 * 1024 * 1024,
        ),
        cost_estimate=pl.CostEstimate(
            flops=flops, transcendentals=0, bytes_accessed=bytes_accessed),
    )(x, w1, b1, w2, b2, w3, b3)

    return out


def init_params(key, num_features):
    """Deterministic init mirroring PyTorch Linear default (U[-1/sqrt(fan_in), +])."""
    dims = [(num_features, 64), (64, 32), (32, 1)]
    params = []
    for i, (fan_in, fan_out) in enumerate(dims):
        kw, kb = jax.random.split(jax.random.fold_in(key, i))
        bound = 1.0 / jnp.sqrt(fan_in)
        w = jax.random.uniform(kw, (fan_in, fan_out), jnp.float32, -bound, bound)
        b = jax.random.uniform(kb, (1, fan_out), jnp.float32, -bound, bound)
        params.extend([w, b])
    return tuple(params)


def reference_forward(x, params):
    w1, b1, w2, b2, w3, b3 = params
    h1 = jnp.maximum(x @ w1 + b1, 0.0)
    h2 = jnp.maximum(h1 @ w2 + b2, 0.0)
    return h2 @ w3 + b3


if __name__ == "__main__":
    key = jax.random.PRNGKey(0)
    num_features = 32
    batch = 200  # deliberately not tile-aligned: exercises the partial tail block

    k_x, k_p = jax.random.split(key)
    x = jax.random.normal(k_x, (batch, num_features), jnp.float32)
    params = init_params(k_p, num_features)

    ref = reference_forward(x, params)

    # Default config (auto tile sizing).
    out = regression_model_forward(x, params)
    jax.block_until_ready(out)
    assert out.shape == (batch, 1)
    assert jnp.allclose(out, ref, atol=1e-5, rtol=1e-5)

    # Forced multi-step grid with a non-aligned tail (128 + 72 rows): checks the
    # partial-last-block path and the per-step index maps.
    out2 = regression_model_forward(x, params, block_b=128)
    jax.block_until_ready(out2)
    assert jnp.allclose(out2, ref, atol=1e-5, rtol=1e-5)

    # Opt-in bf16 streaming path (halves HBM read of x); looser tolerance.
    out3 = regression_model_forward(x, params, use_bf16=True)
    jax.block_until_ready(out3)
    assert jnp.allclose(out3, ref, atol=5e-2, rtol=5e-2)

    print("KERNEL_OK")
</pallas_src>

<mosaic_0001>
module attributes {stable_mosaic.version = 11 : i64} {
  func.func @_mlp_kernel(%arg0: i32, %arg1: memref<256x32xf32, #tpu.memory_space<vmem>>, %arg2: memref<32x64xf32, #tpu.memory_space<vmem>>, %arg3: memref<1x64xf32, #tpu.memory_space<vmem>>, %arg4: memref<64x32xf32, #tpu.memory_space<vmem>>, %arg5: memref<1x32xf32, #tpu.memory_space<vmem>>, %arg6: memref<32x1xf32, #tpu.memory_space<vmem>>, %arg7: memref<1x1xf32, #tpu.memory_space<vmem>>, %arg8: memref<256x1xf32, #tpu.memory_space<vmem>>) attributes {dimension_semantics = [#tpu.dimension_semantics<parallel>], iteration_bounds = array<i64: 1>, scalar_prefetch = 0 : i64, scratch_operands = 0 : i64, tpu.core_type = #tpu.core_type<tc>, window_params = [{transform_indices = @transform_0, window_bounds = array<i64: 256, 32>}, {pipeline_mode = #tpu.pipeline_mode<synchronous>, transform_indices = @transform_1, window_bounds = array<i64: 32, 64>}, {pipeline_mode = #tpu.pipeline_mode<synchronous>, transform_indices = @transform_2, window_bounds = array<i64: 1, 64>}, {pipeline_mode = #tpu.pipeline_mode<synchronous>, transform_indices = @transform_3, window_bounds = array<i64: 64, 32>}, {pipeline_mode = #tpu.pipeline_mode<synchronous>, transform_indices = @transform_4, window_bounds = array<i64: 1, 32>}, {pipeline_mode = #tpu.pipeline_mode<synchronous>, transform_indices = @transform_5, window_bounds = array<i64: 32, 1>}, {pipeline_mode = #tpu.pipeline_mode<synchronous>, transform_indices = @transform_6, window_bounds = array<i64: 1, 1>}, {transform_indices = @transform_7, window_bounds = array<i64: 256, 1>}]} {
    %c0 = arith.constant 0 : index
    %c0_0 = arith.constant 0 : index
    %0 = vector.load %arg1[%c0, %c0_0] : memref<256x32xf32, #tpu.memory_space<vmem>>, vector<256x32xf32>
    %c0_1 = arith.constant 0 : index
    %c0_2 = arith.constant 0 : index
    %1 = vector.load %arg2[%c0_1, %c0_2] : memref<32x64xf32, #tpu.memory_space<vmem>>, vector<32x64xf32>
    %cst = arith.constant dense<0.000000e+00> : vector<256x64xf32>
    %2 = tpu.matmul %0, %1, %cst {dimension_numbers = #tpu.dot_dimension_numbers<[1], [0], [0], [1], [0, 0, 1, 1], [], []>} : vector<256x32xf32>, vector<32x64xf32>, vector<256x64xf32> -> vector<256x64xf32>
    %c0_3 = arith.constant 0 : index
    %c0_4 = arith.constant 0 : index
    %3 = vector.load %arg3[%c0_3, %c0_4] : memref<1x64xf32, #tpu.memory_space<vmem>>, vector<1x64xf32>
    %4 = vector.broadcast %3 : vector<1x64xf32> to vector<256x64xf32>
    %5 = arith.addf %2, %4 : vector<256x64xf32>
    %cst_5 = arith.constant 0.000000e+00 : f32
    %6 = vector.broadcast %cst_5 : f32 to vector<256x64xf32>
    %7 = arith.maximumf %5, %6 : vector<256x64xf32>
    %c0_6 = arith.constant 0 : index
    %c0_7 = arith.constant 0 : index
    %8 = vector.load %arg4[%c0_6, %c0_7] : memref<64x32xf32, #tpu.memory_space<vmem>>, vector<64x32xf32>
    %cst_8 = arith.constant dense<0.000000e+00> : vector<256x32xf32>
    %9 = tpu.matmul %7, %8, %cst_8 {dimension_numbers = #tpu.dot_dimension_numbers<[1], [0], [0], [1], [0, 0, 1, 1], [], []>} : vector<256x64xf32>, vector<64x32xf32>, vector<256x32xf32> -> vector<256x32xf32>
    %c0_9 = arith.constant 0 : index
    %c0_10 = arith.constant 0 : index
    %10 = vector.load %arg5[%c0_9, %c0_10] : memref<1x32xf32, #tpu.memory_space<vmem>>, vector<1x32xf32>
    %11 = vector.broadcast %10 : vector<1x32xf32> to vector<256x32xf32>
    %12 = arith.addf %9, %11 : vector<256x32xf32>
    %cst_11 = arith.constant 0.000000e+00 : f32
    %13 = vector.broadcast %cst_11 : f32 to vector<256x32xf32>
    %14 = arith.maximumf %12, %13 : vector<256x32xf32>
    %c0_12 = arith.constant 0 : index
    %c0_13 = arith.constant 0 : index
    %15 = vector.load %arg6[%c0_12, %c0_13] : memref<32x1xf32, #tpu.memory_space<vmem>>, vector<32x1xf32>
    %cst_14 = arith.constant dense<0.000000e+00> : vector<256x1xf32>
    %16 = tpu.matmul %14, %15, %cst_14 {dimension_numbers = #tpu.dot_dimension_numbers<[1], [0], [0], [1], [0, 0, 1, 1], [], []>} : vector<256x32xf32>, vector<32x1xf32>, vector<256x1xf32> -> vector<256x1xf32>
    %c0_15 = arith.constant 0 : index
    %c0_16 = arith.constant 0 : index
    %17 = vector.load %arg7[%c0_15, %c0_16] : memref<1x1xf32, #tpu.memory_space<vmem>>, vector<1x1xf32>
    %18 = vector.broadcast %17 : vector<1x1xf32> to vector<256x1xf32>
    %19 = arith.addf %16, %18 : vector<256x1xf32>
    %c0_17 = arith.constant 0 : index
    %c0_18 = arith.constant 0 : index
    %20 = vector.load %arg8[%c0_17, %c0_18] : memref<256x1xf32, #tpu.memory_space<vmem>>, vector<256x1xf32>
    tpu.vector_store %arg8[%c0_17, %c0_18], %19 {strides = array<i32>} : memref<256x1xf32, #tpu.memory_space<vmem>>, vector<256x1xf32>,
    return
  }
  func.func @transform_0(%arg0: i32) -> (i32, i32) {
    %c0_i32 = arith.constant 0 : i32
    %c0_i32_0 = arith.constant 0 : i32
    return %arg0, %c0_i32 : i32, i32
  }
  func.func @transform_1(%arg0: i32) -> (i32, i32) {
    %c0_i32 = arith.constant 0 : i32
    %c0_i32_0 = arith.constant 0 : i32
    %c0_i32_1 = arith.constant 0 : i32
    return %c0_i32, %c0_i32_0 : i32, i32
  }
  func.func @transform_2(%arg0: i32) -> (i32, i32) {
    %c0_i32 = arith.constant 0 : i32
    %c0_i32_0 = arith.constant 0 : i32
    %c0_i32_1 = arith.constant 0 : i32
    return %c0_i32, %c0_i32_0 : i32, i32
  }
  func.func @transform_3(%arg0: i32) -> (i32, i32) {
    %c0_i32 = arith.constant 0 : i32
    %c0_i32_0 = arith.constant 0 : i32
    %c0_i32_1 = arith.constant 0 : i32
    return %c0_i32, %c0_i32_0 : i32, i32
  }
  func.func @transform_4(%arg0: i32) -> (i32, i32) {
    %c0_i32 = arith.constant 0 : i32
    %c0_i32_0 = arith.constant 0 : i32
    %c0_i32_1 = arith.constant 0 : i32
    return %c0_i32, %c0_i32_0 : i32, i32
  }
  func.func @transform_5(%arg0: i32) -> (i32, i32) {
    %c0_i32 = arith.constant 0 : i32
    %c0_i32_0 = arith.constant 0 : i32
    %c0_i32_1 = arith.constant 0 : i32
    return %c0_i32, %c0_i32_0 : i32, i32
  }
  func.func @transform_6(%arg0: i32) -> (i32, i32) {
    %c0_i32 = arith.constant 0 : i32
    %c0_i32_0 = arith.constant 0 : i32
    %c0_i32_1 = arith.constant 0 : i32
    return %c0_i32, %c0_i32_0 : i32, i32
  }
  func.func @transform_7(%arg0: i32) -> (i32, i32) {
    %c0_i32 = arith.constant 0 : i32
    %c0_i32_0 = arith.constant 0 : i32
    return %arg0, %c0_i32 : i32, i32
  }
}

</mosaic_0001>

<bundles_post_ra>
// kernel: regression_model_forward.1
= control target key start
LH: loop header
LB: loop body
LE: loop exit
PB: predicated region body
PF: predicated region fallthrough
CT: control target
= control target key end

     0   :  { %s1550_s0 = inlined_call_operand.vmem [shape: f32[200,32], index: 0, kind: input, shape index: {}]   ;;  %s1551_s1 = inlined_call_operand.vmem [shape: f32[32,64], index: 1, kind: input, shape index: {}]   ;;  %s1552_s2 = inlined_call_operand.vmem [shape: f32[1,64], index: 2, kind: input, shape index: {}]   ;;  %s1553_s3 = inlined_call_operand.vmem [shape: f32[64,32], index: 3, kind: input, shape index: {}]   ;;  %s1554_s4 = inlined_call_operand.vmem [shape: f32[1,32], index: 4, kind: input, shape index: {}]   ;;  %s1555_s5 = inlined_call_operand.vmem [shape: f32[32,1], index: 5, kind: input, shape index: {}]   ;;  %s1556_s6 = inlined_call_operand.<no memory space> [shape: f32[1,1], index: 6, kind: input, shape index: {}]   ;;  %s1557_s7 = inlined_call_operand.vmem [shape: f32[200,1], index: 7, kind: output, shape index: {}]  }
   0x1   :  { %v12_v0 = vstv %s1556_s6 }
   0x2   :  { %13 = vst [vmem:[#allocation2] sm:$0x1] %v12_v0 }
   0x3   :  { %v63_v1 = vld [vmem:[%s1551_s1 + $0x18] sm:$0xff]  ;;  %v62_v2 = vld [vmem:[%s1551_s1 + $0x10] sm:$0xff]  ;;  %v61_v3 = vld [vmem:[%s1551_s1 + $0x8] sm:$0xff]  ;;  %vm68_vm0 = vcmask 261120   ;;  %vm322_vm1 = vcmask 523264   ;;  %vm781_vm2 = vcmask 7168  }
   0x4   :  { %177 = vmatpush.msra.mxu0 %v63_v1  ;;  %1047 = vmatpush.msra.mxu3 %v63_v1  ;;  %v60_v4 = vld [vmem:[%s1551_s1] sm:$0xff]  ;;  %v29_v6 = vld [vmem:[%s1550_s0 + $0x8] sm:$0xff]  ;;  %v30_v7 = vld [vmem:[%s1550_s0 + $0x10] sm:$0xff] }
   0x5   :  { %v28_v5 = vld [vmem:[%s1550_s0] sm:$0xff]  ;;  %v31_v8 = vld [vmem:[%s1550_s0 + $0x18] sm:$0xff]  ;;  %v33_v10 = vld [vmem:[%s1550_s0 + $0x28] sm:$0xff] }
   0x6   :  { %178 = vmatpush.msra.mxu0 %v62_v2  ;;  %1048 = vmatpush.msra.mxu3 %v62_v2  ;;  %v32_v9 = vld [vmem:[%s1550_s0 + $0x20] sm:$0xff]  ;;  %v34_v11 = vld [vmem:[%s1550_s0 + $0x30] sm:$0xff]  ;;  %v35_v12 = vld [vmem:[%s1550_s0 + $0x38] sm:$0xff] }
   0x7   :  { %v36_v13 = vld [vmem:[%s1550_s0 + $0x40] sm:$0xff]  ;;  %v37_v14 = vld [vmem:[%s1550_s0 + $0x48] sm:$0xff]  ;;  %v38_v15 = vld [vmem:[%s1550_s0 + $0x50] sm:$0xff] }
   0x8   :  { %179 = vmatpush.msra.mxu0 %v61_v3  ;;  %1049 = vmatpush.msra.mxu3 %v61_v3  ;;  %v317_v16 = vld [vmem:[%s1553_s3 + $0x38] sm:$0xff]  ;;  %v316_v17 = vld [vmem:[%s1553_s3 + $0x30] sm:$0xff]  ;;  %v315_v18 = vld [vmem:[%s1553_s3 + $0x28] sm:$0xff] }
   0x9   :  { %427 = vmatpush.msra.mxu1 %v317_v16  ;;  %v39_v19 = vld [vmem:[%s1550_s0 + $0x58] sm:$0xff]  ;;  %v314_v20 = vld [vmem:[%s1553_s3 + $0x20] sm:$0xff]  ;;  %v312_v22 = vld [vmem:[%s1553_s3 + $0x10] sm:$0xff] }
   0xa   :  { %180 = vmatpush.msra.mxu0 %v60_v4  ;;  %1050 = vmatpush.msra.mxu3 %v60_v4  ;;  %v313_v21 = vld [vmem:[%s1553_s3 + $0x18] sm:$0xff]  ;;  %v40_v23 = vld [vmem:[%s1550_s0 + $0x60] sm:$0xff]  ;;  %v311_v24 = vld [vmem:[%s1553_s3 + $0x8] sm:$0xff] }
   0xb   :  { %951 = vmatmul.msk.f32.vlgmr.msra.gmra.mxu0 %vm68_vm0, %v28_v5  ;;  %428 = vmatpush.msra.mxu1 %v316_v17  ;;  %v310_v25 = vld [vmem:[%s1553_s3] sm:$0xff]  ;;  %v41_v26 = vld [vmem:[%s1550_s0 + $0x68] sm:$0xff]  ;;  %v42_v27 = vld [vmem:[%s1550_s0 + $0x70] sm:$0xff] }
   0xc   :  { %1051 = vmatpush.msrb.mxu3 %v317_v16  ;;  %v43_v28 = vld [vmem:[%s1550_s0 + $0x78] sm:$0xff]  ;;  %v1212_v29 = vld [vmem:[%s1552_s2] ss:$0 sm:$0xff]  ;;  %v45_v35 = vld [vmem:[%s1550_s0 + $0x88] sm:$0xff] }
   0xd   :  { %429 = vmatpush.msra.mxu1 %v315_v18  ;;  %v44_v31 = vld [vmem:[%s1550_s0 + $0x80] sm:$0xff]  ;;  %v46_v39 = vld [vmem:[%s1550_s0 + $0x90] sm:$0xff]  ;;  %v47_v43 = vld [vmem:[%s1550_s0 + $0x98] sm:$0xff] }
   0xe   :  { %1052 = vmatpush.msrb.mxu3 %v316_v17  ;;  %v48_v47 = vld [vmem:[%s1550_s0 + $0xa0] sm:$0xff]  ;;  %v53_v50 = vld [vmem:[%s1550_s0 + $0xc8] sm:$0xff]  ;;  %v54_v55 = vld [vmem:[%s1550_s0 + $0xd0] sm:$0xff] }
   0xf   :  { %430 = vmatpush.msra.mxu1 %v314_v20  ;;  %976 = vmatmul.msk.f32.vlgmr.msra.gmra.mxu3 %vm68_vm0, %v53_v50  ;;  %v49_v52 = vld [vmem:[%s1550_s0 + $0xa8] sm:$0xff]  ;;  %v50_v57 = vld [vmem:[%s1550_s0 + $0xb0] sm:$0xff]  ;;  %v55_v60 = vld [vmem:[%s1550_s0 + $0xd8] sm:$0xff] }
  0x10   :  { %1053 = vmatpush.msrb.mxu3 %v315_v18  ;;  %v51_v62 = vld [vmem:[%s1550_s0 + $0xb8] sm:$0xff]  ;;  %v56_v1 = vld [vmem:[%s1550_s0 + $0xe0] sm:$0xff] }
  0x11   :  { %431 = vmatpush.msra.mxu1 %v313_v21  ;;  %v52_v3 = vld [vmem:[%s1550_s0 + $0xc0] sm:$0xff]  ;;  %v567_v18 = vld [vmem:[%s1555_s5 + $0x18] sm:$0xff] }
  0x12   :  { %1054 = vmatpush.msrb.mxu3 %v314_v20  ;;  %680 = vmatpush.msra.mxu2 %v567_v18 }
  0x13   :  { %952 = vmatmul.msk.f32.gmra.mxu0 %vm68_vm0, %v29_v6  ;;  %432 = vmatpush.msra.mxu1 %v312_v22  ;;  %v57_v6 = vld [vmem:[%s1550_s0 + $0xe8] sm:$0xff] }
  0x14   :  { %1055 = vmatpush.msrb.mxu3 %v313_v21  ;;  %v566_v21 = vld [vmem:[%s1555_s5 + $0x10] sm:$0xff] }
  0x15   :  { %433 = vmatpush.msra.mxu1 %v311_v24  ;;  %681 = vmatpush.msra.mxu2 %v566_v21 }
  0x16   :  { %1056 = vmatpush.msrb.mxu3 %v312_v22 }
  0x17   :  { %434 = vmatpush.msra.mxu1 %v310_v25  ;;  %977 = vmatmul.msk.f32.gmra.mxu3 %vm68_vm0, %v54_v55 }
  0x18   :  { %1057 = vmatpush.msrb.mxu3 %v311_v24  ;;  %v564_v24 = vld [vmem:[%s1555_s5] sm:$0xff] }
  0x1a   :  { %1058 = vmatpush.msrb.mxu3 %v310_v25 }
  0x1b   :  { %953 = vmatmul.msk.f32.gmra.mxu0 %vm68_vm0, %v30_v7 }
  0x1c   :  { %1059 = vmatpush.msra.mxu3 %v567_v18 }
  0x1e   :  { %1060 = vmatpush.msra.mxu3 %v566_v21 }
  0x1f   :  { %978 = vmatmul.msk.f32.gmra.mxu3 %vm68_vm0, %v55_v60 }
  0x23   :  { %954 = vmatmul.msk.f32.gmra.mxu0 %vm68_vm0, %v31_v8 }
  0x27   :  { %979 = vmatmul.msk.f32.gmra.mxu3 %vm68_vm0, %v56_v1 }
  0x2b   :  { %955 = vmatmul.msk.f32.gmra.mxu0 %vm68_vm0, %v32_v9 }
  0x2f   :  { %980 = vmatmul.msk.f32.gmra.mxu3 %vm68_vm0, %v57_v6 }
  0x33   :  { %956 = vmatmul.msk.f32.gmra.mxu0 %vm68_vm0, %v33_v10  ;;  %v58_v10 = vld [vmem:[%s1550_s0 + $0xf0] sm:$0xff] }
  0x37   :  { %981 = vmatmul.msk.f32.gmra.mxu3 %vm68_vm0, %v58_v10 }
  0x3b   :  { %957 = vmatmul.msk.f32.gmra.mxu0 %vm68_vm0, %v34_v11 }
  0x43   :  { %958 = vmatmul.msk.f32.gmra.mxu0 %vm68_vm0, %v35_v12 }
  0x4b   :  { %959 = vmatmul.msk.f32.gmra.mxu0 %vm68_vm0, %v36_v13 }
  0x53   :  { %960 = vmatmul.msk.f32.gmra.mxu0 %vm68_vm0, %v37_v14  ;;  %v59_v14 = vld [vmem:[%s1550_s0 + $0xf8] sm:$0xff] }
  0x54   :  { %982 = vmatmul.msk.f32.gmra.mxu3 %vm68_vm0, %v59_v14 }
  0x5b   :  { %961 = vmatmul.msk.f32.gmra.mxu0 %vm68_vm0, %v38_v15 }
  0x63   :  { %962 = vmatmul.msk.f32.gmra.mxu0 %vm68_vm0, %v39_v19 }
  0x6b   :  { %963 = vmatmul.msk.f32.gmra.mxu0 %vm68_vm0, %v40_v23  ;;  %v565_v23 = vld [vmem:[%s1555_s5 + $0x8] sm:$0xff] }
  0x6c   :  { %682 = vmatpush.msra.mxu2 %v565_v23  ;;  %1061 = vmatpush.msra.mxu3 %v565_v23 }
  0x6e   :  { %683 = vmatpush.msra.mxu2 %v564_v24  ;;  %1062 = vmatpush.msra.mxu3 %v564_v24 }
  0x73   :  { %964 = vmatmul.msk.f32.gmra.mxu0 %vm68_vm0, %v41_v26 }
  0x7b   :  { %965 = vmatmul.msk.f32.gmra.mxu0 %vm68_vm0, %v42_v27 }
  0x83   :  { %966 = vmatmul.msk.f32.gmra.mxu0 %vm68_vm0, %v43_v28 }
  0x88   :  { %v182_v30 = vpop.f32.mrf.mxu0 }
  0x89   :  { %v183_v32 = vadd.f32 %v1212_v29, %v182_v30 }
  0x8b   :  { %v278_v33 = vmax.f32 %v183_v32, 0.0  ;;  %967 = vmatmul.msk.f32.gmra.mxu0 %vm68_vm0, %v44_v31 }
  0x8d   :  { %983 = vmatmul.msk.f32.vlgmr.msra.gmra.mxu1 %vm322_vm1, %v278_v33 }
  0x90   :  { %v185_v34 = vpop.f32.mrf.mxu0 }
  0x91   :  { %v186_v36 = vadd.f32 %v1212_v29, %v185_v34 }
  0x92   :  { %v257_v14 = vpop.f32.mrf.mxu3 }
  0x93   :  { %v279_v37 = vmax.f32 %v186_v36, 0.0  ;;  %968 = vmatmul.msk.f32.gmra.mxu0 %vm68_vm0, %v45_v35  ;;  %v1325_v35 = vld [vmem:[%s1554_s4] ss:$0 sm:$0xff] }
  0x95   :  { %984 = vmatmul.msk.f32.gmra.mxu1 %vm322_vm1, %v279_v37 }
  0x98   :  { %v188_v38 = vpop.f32.mrf.mxu0 }
  0x99   :  { %v189_v40 = vadd.f32 %v1212_v29, %v188_v38 }
  0x9b   :  { %v280_v41 = vmax.f32 %v189_v40, 0.0  ;;  %969 = vmatmul.msk.f32.gmra.mxu0 %vm68_vm0, %v46_v39 }
  0x9d   :  { %985 = vmatmul.msk.f32.gmra.mxu1 %vm322_vm1, %v280_v41 }
  0xa0   :  { %v191_v42 = vpop.f32.mrf.mxu0 }
  0xa1   :  { %v192_v44 = vadd.f32 %v1212_v29, %v191_v42 }
  0xa3   :  { %v281_v45 = vmax.f32 %v192_v44, 0.0  ;;  %970 = vmatmul.msk.f32.gmra.mxu0 %vm68_vm0, %v47_v43 }
  0xa5   :  { %986 = vmatmul.msk.f32.gmra.mxu1 %vm322_vm1, %v281_v45 }
  0xa8   :  { %v194_v46 = vpop.f32.mrf.mxu0 }
  0xa9   :  { %v195_v48 = vadd.f32 %v1212_v29, %v194_v46 }
  0xab   :  { %v282_v49 = vmax.f32 %v195_v48, 0.0  ;;  %971 = vmatmul.msk.f32.gmra.mxu0 %vm68_vm0, %v48_v47 }
  0xad   :  { %987 = vmatmul.msk.f32.gmra.mxu1 %vm322_vm1, %v282_v49 }
  0xb0   :  { %v197_v51 = vpop.f32.mrf.mxu0 }
  0xb1   :  { %v198_v53 = vadd.f32 %v1212_v29, %v197_v51 }
  0xb3   :  { %v283_v54 = vmax.f32 %v198_v53, 0.0  ;;  %972 = vmatmul.msk.f32.gmra.mxu0 %vm68_vm0, %v49_v52 }
  0xb5   :  { %988 = vmatmul.msk.f32.gmra.mxu1 %vm322_vm1, %v283_v54 }
  0xb8   :  { %v200_v56 = vpop.f32.mrf.mxu0 }
  0xb9   :  { %v201_v58 = vadd.f32 %v1212_v29, %v200_v56 }
  0xbb   :  { %v284_v59 = vmax.f32 %v201_v58, 0.0  ;;  %973 = vmatmul.msk.f32.gmra.mxu0 %vm68_vm0, %v50_v57 }
  0xbd   :  { %989 = vmatmul.msk.f32.gmra.mxu1 %vm322_vm1, %v284_v59 }
  0xc0   :  { %v203_v61 = vpop.f32.mrf.mxu0 }
  0xc1   :  { %v204_v63 = vadd.f32 %v1212_v29, %v203_v61 }
  0xc3   :  { %v285_v0 = vmax.f32 %v204_v63, 0.0  ;;  %974 = vmatmul.msk.f32.gmra.mxu0 %vm68_vm0, %v51_v62 }
  0xc5   :  { %990 = vmatmul.msk.f32.gmra.mxu1 %vm322_vm1, %v285_v0 }
  0xc8   :  { %v206_v2 = vpop.f32.mrf.mxu0 }
  0xc9   :  { %v207_v4 = vadd.f32 %v1212_v29, %v206_v2 }
  0xcb   :  { %v286_v5 = vmax.f32 %v207_v4, 0.0  ;;  %975 = vmatmul.msk.f32.gmra.mxu0 %vm68_vm0, %v52_v3 }
  0xcd   :  { %991 = vmatmul.msk.f32.gmra.mxu1 %vm322_vm1, %v286_v5 }
  0xd0   :  { %v209_v7 = vpop.f32.mrf.mxu0 }
  0xd1   :  { %v210_v8 = vadd.f32 %v1212_v29, %v209_v7 }
  0xd3   :  { %v287_v9 = vmax.f32 %v210_v8, 0.0 }
  0xd5   :  { %992 = vmatmul.msk.f32.gmra.mxu1 %vm322_vm1, %v287_v9 }
  0xd8   :  { %v212_v11 = vpop.f32.mrf.mxu0 }
  0xd9   :  { %v213_v12 = vadd.f32 %v1212_v29, %v212_v11 }
  0xdb   :  { %v288_v13 = vmax.f32 %v213_v12, 0.0 }
  0xdd   :  { %993 = vmatmul.msk.f32.gmra.mxu1 %vm322_vm1, %v288_v13 }
  0xe0   :  { %v215_v15 = vpop.f32.mrf.mxu0 }
  0xe1   :  { %v216_v16 = vadd.f32 %v1212_v29, %v215_v15 }
  0xe3   :  { %v289_v17 = vmax.f32 %v216_v16, 0.0 }
  0xe5   :  { %994 = vmatmul.msk.f32.gmra.mxu1 %vm322_vm1, %v289_v17 }
  0xe8   :  { %v218_v19 = vpop.f32.mrf.mxu0 }
  0xe9   :  { %v219_v20 = vadd.f32 %v1212_v29, %v218_v19 }
  0xeb   :  { %v290_v22 = vmax.f32 %v219_v20, 0.0 }
  0xed   :  { %995 = vmatmul.msk.f32.gmra.mxu1 %vm322_vm1, %v290_v22  ;;  %v260_v22 = vpop.f32.mrf.mxu3 }
  0xf0   :  { %v221_v25 = vpop.f32.mrf.mxu0 }
  0xf1   :  { %v222_v26 = vadd.f32 %v1212_v29, %v221_v25 }
  0xf3   :  { %v291_v27 = vmax.f32 %v222_v26, 0.0 }
  0xf5   :  { %996 = vmatmul.msk.f32.gmra.mxu1 %vm322_vm1, %v291_v27 }
  0xf8   :  { %v224_v28 = vpop.f32.mrf.mxu0 }
  0xf9   :  { %v225_v30 = vadd.f32 %v1212_v29, %v224_v28  ;;  %v258_v28 = vadd.f32 %v1212_v29, %v257_v14 }
  0xfb   :  { %v292_v31 = vmax.f32 %v225_v30, 0.0  ;;  %v303_v30 = vmax.f32 %v258_v28, 0.0 }
  0xfd   :  { %997 = vmatmul.msk.f32.gmra.mxu1 %vm322_vm1, %v292_v31 }
 0x100   :  { %v227_v32 = vpop.f32.mrf.mxu0 }
 0x101   :  { %v228_v33 = vadd.f32 %v1212_v29, %v227_v32  ;;  %v263_v32 = vpop.f32.mrf.mxu3 }
 0x103   :  { %v293_v34 = vmax.f32 %v228_v33, 0.0 }
 0x105   :  { %998 = vmatmul.msk.f32.gmra.mxu1 %vm322_vm1, %v293_v34 }
 0x108   :  { %v230_v36 = vpop.f32.mrf.mxu0 }
 0x109   :  { %v231_v37 = vadd.f32 %v1212_v29, %v230_v36  ;;  %v261_v36 = vadd.f32 %v1212_v29, %v260_v22 }
 0x10a   :  { %v436_v38 = vpop.f32.mrf.mxu1 }
 0x10b   :  { %v294_v39 = vmax.f32 %v231_v37, 0.0  ;;  %v437_v40 = vadd.f32 %v1325_v35, %v436_v38  ;;  %v304_v37 = vmax.f32 %v261_v36, 0.0 }
 0x10d   :  { %v532_v41 = vmax.f32 %v437_v40, 0.0  ;;  %999 = vmatmul.msk.f32.gmra.mxu1 %vm322_vm1, %v294_v39  ;;  %v266_v40 = vpop.f32.mrf.mxu3 }
 0x10f   :  { %1015 = vmatmul.msk.f32.vlgmr.msra.gmra.mxu2 %vm68_vm0, %v532_v41 }
 0x110   :  { %v233_v42 = vpop.f32.mrf.mxu0 }
 0x111   :  { %v234_v43 = vadd.f32 %v1212_v29, %v233_v42  ;;  %v264_v42 = vadd.f32 %v1212_v29, %v263_v32 }
 0x112   :  { %v439_v44 = vpop.f32.mrf.mxu1 }
 0x113   :  { %v295_v45 = vmax.f32 %v234_v43, 0.0  ;;  %v440_v46 = vadd.f32 %v1325_v35, %v439_v44  ;;  %v305_v43 = vmax.f32 %v264_v42, 0.0 }
 0x115   :  { %v533_v47 = vmax.f32 %v440_v46, 0.0  ;;  %1000 = vmatmul.msk.f32.gmra.mxu1 %vm322_vm1, %v295_v45 }
 0x117   :  { %1016 = vmatmul.msk.f32.gmra.mxu2 %vm68_vm0, %v533_v47  ;;  %v267_v47 = vadd.f32 %v1212_v29, %v266_v40 }
 0x118   :  { %v236_v48 = vpop.f32.mrf.mxu0 }
 0x119   :  { %v237_v49 = vadd.f32 %v1212_v29, %v236_v48  ;;  %v269_v48 = vpop.f32.mrf.mxu3 }
 0x11a   :  { %v442_v50 = vpop.f32.mrf.mxu1 }
 0x11b   :  { %v296_v51 = vmax.f32 %v237_v49, 0.0  ;;  %v443_v52 = vadd.f32 %v1325_v35, %v442_v50  ;;  %v306_v49 = vmax.f32 %v267_v47, 0.0 }
 0x11d   :  { %v534_v53 = vmax.f32 %v443_v52, 0.0  ;;  %1001 = vmatmul.msk.f32.gmra.mxu1 %vm322_vm1, %v296_v51 }
 0x11f   :  { %1017 = vmatmul.msk.f32.gmra.mxu2 %vm68_vm0, %v534_v53  ;;  %v270_v53 = vadd.f32 %v1212_v29, %v269_v48 }
 0x120   :  { %v239_v54 = vpop.f32.mrf.mxu0 }
 0x121   :  { %v240_v55 = vadd.f32 %v1212_v29, %v239_v54  ;;  %v272_v54 = vpop.f32.mrf.mxu3 }
 0x122   :  { %v445_v56 = vpop.f32.mrf.mxu1 }
 0x123   :  { %v297_v57 = vmax.f32 %v240_v55, 0.0  ;;  %v446_v58 = vadd.f32 %v1325_v35, %v445_v56  ;;  %v307_v55 = vmax.f32 %v270_v53, 0.0 }
 0x125   :  { %v535_v59 = vmax.f32 %v446_v58, 0.0  ;;  %1002 = vmatmul.msk.f32.gmra.mxu1 %vm322_vm1, %v297_v57 }
 0x127   :  { %1018 = vmatmul.msk.f32.gmra.mxu2 %vm68_vm0, %v535_v59  ;;  %v273_v59 = vadd.f32 %v1212_v29, %v272_v54 }
 0x128   :  { %v242_v60 = vpop.f32.mrf.mxu0 }
 0x129   :  { %v243_v61 = vadd.f32 %v1212_v29, %v242_v60  ;;  %v308_v60 = vmax.f32 %v273_v59, 0.0 }
 0x12a   :  { %v448_v62 = vpop.f32.mrf.mxu1 }
 0x12b   :  { %v298_v63 = vmax.f32 %v243_v61, 0.0  ;;  %v449_v0 = vadd.f32 %v1325_v35, %v448_v62  ;;  %v275_v62 = vpop.f32.mrf.mxu3 }
 0x12d   :  { %v536_v1 = vmax.f32 %v449_v0, 0.0  ;;  %1003 = vmatmul.msk.f32.gmra.mxu1 %vm322_vm1, %v298_v63 }
 0x12f   :  { %1019 = vmatmul.msk.f32.gmra.mxu2 %vm68_vm0, %v536_v1  ;;  %v276_v1 = vadd.f32 %v1212_v29, %v275_v62 }
 0x130   :  { %v245_v2 = vpop.f32.mrf.mxu0 }
 0x131   :  { %v246_v3 = vadd.f32 %v1212_v29, %v245_v2  ;;  %v309_v2 = vmax.f32 %v276_v1, 0.0 }
 0x132   :  { %v451_v4 = vpop.f32.mrf.mxu1 }
 0x133   :  { %v299_v5 = vmax.f32 %v246_v3, 0.0  ;;  %v452_v6 = vadd.f32 %v1325_v35, %v451_v4 }
 0x135   :  { %v537_v7 = vmax.f32 %v452_v6, 0.0  ;;  %1004 = vmatmul.msk.f32.gmra.mxu1 %vm322_vm1, %v299_v5 }
 0x137   :  { %1020 = vmatmul.msk.f32.gmra.mxu2 %vm68_vm0, %v537_v7 }
 0x138   :  { %v248_v8 = vpop.f32.mrf.mxu0 }
 0x139   :  { %v249_v9 = vadd.f32 %v1212_v29, %v248_v8 }
 0x13a   :  { %v454_v10 = vpop.f32.mrf.mxu1 }
 0x13b   :  { %v300_v11 = vmax.f32 %v249_v9, 0.0  ;;  %v455_v12 = vadd.f32 %v1325_v35, %v454_v10  ;;  %v1393_v9 = vld [vmem:[#allocation2] ss:$0 sm:$0xff] }
 0x13d   :  { %v538_v13 = vmax.f32 %v455_v12, 0.0  ;;  %1005 = vmatmul.msk.f32.gmra.mxu1 %vm322_vm1, %v300_v11 }
 0x13f   :  { %1021 = vmatmul.msk.f32.gmra.mxu2 %vm68_vm0, %v538_v13 }
 0x140   :  { %v251_v15 = vpop.f32.mrf.mxu0 }
 0x141   :  { %v252_v16 = vadd.f32 %v1212_v29, %v251_v15 }
 0x142   :  { %v457_v17 = vpop.f32.mrf.mxu1 }
 0x143   :  { %v301_v18 = vmax.f32 %v252_v16, 0.0  ;;  %v458_v19 = vadd.f32 %v1325_v35, %v457_v17 }
 0x145   :  { %v539_v20 = vmax.f32 %v458_v19, 0.0  ;;  %1006 = vmatmul.msk.f32.gmra.mxu1 %vm322_vm1, %v301_v18 }
 0x147   :  { %1022 = vmatmul.msk.f32.gmra.mxu2 %vm68_vm0, %v539_v20 }
 0x148   :  { %v254_v21 = vpop.f32.mrf.mxu0 }
 0x149   :  { %v255_v23 = vadd.f32 %v1212_v29, %v254_v21 }
 0x14a   :  { %v460_v24 = vpop.f32.mrf.mxu1 }
 0x14b   :  { %v302_v25 = vmax.f32 %v255_v23, 0.0  ;;  %v461_v26 = vadd.f32 %v1325_v35, %v460_v24 }
 0x14d   :  { %v540_v27 = vmax.f32 %v461_v26, 0.0  ;;  %1007 = vmatmul.msk.f32.vlgmr.msrb.gmra.mxu3 %vm322_vm1, %v302_v25 }
 0x14f   :  { %1023 = vmatmul.msk.f32.gmra.mxu2 %vm68_vm0, %v540_v27 }
 0x152   :  { %v463_v31 = vpop.f32.mrf.mxu1 }
 0x153   :  { %v464_v33 = vadd.f32 %v1325_v35, %v463_v31 }
 0x155   :  { %v541_v34 = vmax.f32 %v464_v33, 0.0  ;;  %1008 = vmatmul.msk.f32.gmra.mxu3 %vm322_vm1, %v303_v30 }
 0x157   :  { %1024 = vmatmul.msk.f32.gmra.mxu2 %vm68_vm0, %v541_v34 }
 0x15a   :  { %v466_v38 = vpop.f32.mrf.mxu1 }
 0x15b   :  { %v467_v39 = vadd.f32 %v1325_v35, %v466_v38 }
 0x15d   :  { %v542_v41 = vmax.f32 %v467_v39, 0.0  ;;  %1009 = vmatmul.msk.f32.gmra.mxu3 %vm322_vm1, %v304_v37 }
 0x15f   :  { %1025 = vmatmul.msk.f32.gmra.mxu2 %vm68_vm0, %v542_v41 }
 0x162   :  { %v469_v44 = vpop.f32.mrf.mxu1 }
 0x163   :  { %v470_v45 = vadd.f32 %v1325_v35, %v469_v44 }
 0x165   :  { %v543_v46 = vmax.f32 %v470_v45, 0.0  ;;  %1010 = vmatmul.msk.f32.gmra.mxu3 %vm322_vm1, %v305_v43 }
 0x167   :  { %1026 = vmatmul.msk.f32.gmra.mxu2 %vm68_vm0, %v543_v46 }
 0x16a   :  { %v472_v50 = vpop.f32.mrf.mxu1 }
 0x16b   :  { %v473_v51 = vadd.f32 %v1325_v35, %v472_v50 }
 0x16d   :  { %v544_v52 = vmax.f32 %v473_v51, 0.0  ;;  %1011 = vmatmul.msk.f32.gmra.mxu3 %vm322_vm1, %v306_v49 }
 0x16f   :  { %1027 = vmatmul.msk.f32.gmra.mxu2 %vm68_vm0, %v544_v52 }
 0x172   :  { %v475_v56 = vpop.f32.mrf.mxu1 }
 0x173   :  { %v476_v57 = vadd.f32 %v1325_v35, %v475_v56 }
 0x175   :  { %v545_v58 = vmax.f32 %v476_v57, 0.0  ;;  %1012 = vmatmul.msk.f32.gmra.mxu3 %vm322_vm1, %v307_v55 }
 0x177   :  { %1028 = vmatmul.msk.f32.gmra.mxu2 %vm68_vm0, %v545_v58 }
 0x17a   :  { %v478_v61 = vpop.f32.mrf.mxu1 }
 0x17b   :  { %v479_v63 = vadd.f32 %v1325_v35, %v478_v61 }
 0x17d   :  { %v546_v0 = vmax.f32 %v479_v63, 0.0  ;;  %1013 = vmatmul.msk.f32.gmra.mxu3 %vm322_vm1, %v308_v60 }
 0x17f   :  { %1029 = vmatmul.msk.f32.gmra.mxu2 %vm68_vm0, %v546_v0 }
 0x182   :  { %v481_v3 = vpop.f32.mrf.mxu1 }
 0x183   :  { %v482_v4 = vadd.f32 %v1325_v35, %v481_v3 }
 0x185   :  { %v547_v5 = vmax.f32 %v482_v4, 0.0  ;;  %1014 = vmatmul.msk.f32.gmra.mxu3 %vm322_vm1, %v309_v2 }
 0x187   :  { %1030 = vmatmul.msk.f32.gmra.mxu2 %vm68_vm0, %v547_v5 }
 0x18a   :  { %v484_v6 = vpop.f32.mrf.mxu1 }
 0x18b   :  { %v485_v7 = vadd.f32 %v1325_v35, %v484_v6 }
 0x18d   :  { %v548_v8 = vmax.f32 %v485_v7, 0.0 }
 0x18f   :  { %1031 = vmatmul.msk.f32.gmra.mxu2 %vm68_vm0, %v548_v8 }
 0x192   :  { %v487_v29 = vpop.f32.mrf.mxu1  ;;  %v685_v10 = vpop.f32.mrf.mxu2 }
 0x193   :  { %v488_v11 = vadd.f32 %v1325_v35, %v487_v29  ;;  %v686_v12 = vadd.f32 %v1393_v9, %v685_v10 }
 0x195   :  { %v549_v13 = vmax.f32 %v488_v11, 0.0  ;;  %782 = vst.msk [vmem:[#allocation3] sm:$0xff] %vm781_vm2, %v686_v12 }
 0x197   :  { %1032 = vmatmul.msk.f32.gmra.mxu2 %vm68_vm0, %v549_v13 }
 0x19a   :  { %v490_v14 = vpop.f32.mrf.mxu1  ;;  %v688_v15 = vpop.f32.mrf.mxu2 }
 0x19b   :  { %v491_v16 = vadd.f32 %v1325_v35, %v490_v14  ;;  %v689_v17 = vadd.f32 %v1393_v9, %v688_v15 }
 0x19c   :  { %v892_v18 = vld [vmem:[#allocation3] sm:$0xff] }
 0x19d   :  { %893 = vst [vmem:[%s1557_s7] sm:$0xff] %v892_v18  ;;  %v550_v19 = vmax.f32 %v491_v16, 0.0 }
 0x19e   :  { %783 = vst.msk [vmem:[#allocation3 + $0x8] sm:$0xff] %vm781_vm2, %v689_v17 }
 0x19f   :  { %1033 = vmatmul.msk.f32.gmra.mxu2 %vm68_vm0, %v550_v19 }
 0x1a2   :  { %v493_v20 = vpop.f32.mrf.mxu1  ;;  %v691_v21 = vpop.f32.mrf.mxu2 }
 0x1a3   :  { %v494_v22 = vadd.f32 %v1325_v35, %v493_v20  ;;  %v692_v23 = vadd.f32 %v1393_v9, %v691_v21 }
 0x1a5   :  { %v894_v24 = vld [vmem:[#allocation3 + $0x8] sm:$0xff]  ;;  %v551_v25 = vmax.f32 %v494_v22, 0.0  ;;  %784 = vst.msk [vmem:[#allocation3 + $0x10] sm:$0xff] %vm781_vm2, %v692_v23 }
 0x1a6   :  { %895 = vst [vmem:[%s1557_s7 + $0x8] sm:$0xff] %v894_v24 }
 0x1a7   :  { %1034 = vmatmul.msk.f32.gmra.mxu2 %vm68_vm0, %v551_v25 }
 0x1aa   :  { %v496_v26 = vpop.f32.mrf.mxu1  ;;  %v694_v27 = vpop.f32.mrf.mxu2 }
 0x1ab   :  { %v497_v28 = vadd.f32 %v1325_v35, %v496_v26  ;;  %v695_v30 = vadd.f32 %v1393_v9, %v694_v27 }
 0x1ac   :  { %v896_v31 = vld [vmem:[#allocation3 + $0x10] sm:$0xff] }
 0x1ad   :  { %897 = vst [vmem:[%s1557_s7 + $0x10] sm:$0xff] %v896_v31  ;;  %v552_v32 = vmax.f32 %v497_v28, 0.0 }
 0x1ae   :  { %785 = vst.msk [vmem:[#allocation3 + $0x18] sm:$0xff] %vm781_vm2, %v695_v30 }
 0x1af   :  { %1035 = vmatmul.msk.f32.gmra.mxu2 %vm68_vm0, %v552_v32 }
 0x1b2   :  { %v499_v33 = vpop.f32.mrf.mxu1  ;;  %v697_v34 = vpop.f32.mrf.mxu2 }
 0x1b3   :  { %v500_v36 = vadd.f32 %v1325_v35, %v499_v33  ;;  %v698_v37 = vadd.f32 %v1393_v9, %v697_v34 }
 0x1b5   :  { %v898_v38 = vld [vmem:[#allocation3 + $0x18] sm:$0xff]  ;;  %v553_v39 = vmax.f32 %v500_v36, 0.0  ;;  %786 = vst.msk [vmem:[#allocation3 + $0x20] sm:$0xff] %vm781_vm2, %v698_v37 }
 0x1b6   :  { %899 = vst [vmem:[%s1557_s7 + $0x18] sm:$0xff] %v898_v38 }
 0x1b7   :  { %1036 = vmatmul.msk.f32.gmra.mxu2 %vm68_vm0, %v553_v39 }
 0x1ba   :  { %v502_v40 = vpop.f32.mrf.mxu1  ;;  %v700_v41 = vpop.f32.mrf.mxu2 }
 0x1bb   :  { %v503_v42 = vadd.f32 %v1325_v35, %v502_v40  ;;  %v701_v43 = vadd.f32 %v1393_v9, %v700_v41 }
 0x1bc   :  { %v900_v44 = vld [vmem:[#allocation3 + $0x20] sm:$0xff] }
 0x1bd   :  { %901 = vst [vmem:[%s1557_s7 + $0x20] sm:$0xff] %v900_v44  ;;  %v554_v45 = vmax.f32 %v503_v42, 0.0 }
 0x1be   :  { %787 = vst.msk [vmem:[#allocation3 + $0x28] sm:$0xff] %vm781_vm2, %v701_v43 }
 0x1bf   :  { %1037 = vmatmul.msk.f32.gmra.mxu2 %vm68_vm0, %v554_v45 }
 0x1c2   :  { %v505_v46 = vpop.f32.mrf.mxu1  ;;  %v703_v47 = vpop.f32.mrf.mxu2 }
 0x1c3   :  { %v506_v48 = vadd.f32 %v1325_v35, %v505_v46  ;;  %v704_v49 = vadd.f32 %v1393_v9, %v703_v47 }
 0x1c5   :  { %v902_v50 = vld [vmem:[#allocation3 + $0x28] sm:$0xff]  ;;  %v555_v51 = vmax.f32 %v506_v48, 0.0  ;;  %788 = vst.msk [vmem:[#allocation3 + $0x30] sm:$0xff] %vm781_vm2, %v704_v49 }
 0x1c6   :  { %903 = vst [vmem:[%s1557_s7 + $0x28] sm:$0xff] %v902_v50 }
 0x1c7   :  { %1038 = vmatmul.msk.f32.gmra.mxu2 %vm68_vm0, %v555_v51 }
 0x1ca   :  { %v706_v52 = vpop.f32.mrf.mxu2 }
 0x1cb   :  { %v707_v53 = vadd.f32 %v1393_v9, %v706_v52 }
 0x1cc   :  { %v904_v54 = vld [vmem:[#allocation3 + $0x30] sm:$0xff] }
 0x1cd   :  { %905 = vst [vmem:[%s1557_s7 + $0x30] sm:$0xff] %v904_v54 }
 0x1ce   :  { %789 = vst.msk [vmem:[#allocation3 + $0x38] sm:$0xff] %vm781_vm2, %v707_v53 }
 0x1d0   :  { %v508_v55 = vpop.f32.mrf.mxu3 }
 0x1d1   :  { %v509_v56 = vadd.f32 %v1325_v35, %v508_v55 }
 0x1d2   :  { %v709_v57 = vpop.f32.mrf.mxu2 }
 0x1d3   :  { %v556_v58 = vmax.f32 %v509_v56, 0.0  ;;  %v710_v59 = vadd.f32 %v1393_v9, %v709_v57 }
 0x1d5   :  { %v906_v60 = vld [vmem:[#allocation3 + $0x38] sm:$0xff]  ;;  %790 = vst.msk [vmem:[#allocation3 + $0x40] sm:$0xff] %vm781_vm2, %v710_v59  ;;  %1039 = vmatmul.msk.f32.gmra.mxu2 %vm68_vm0, %v556_v58 }
 0x1d6   :  { %907 = vst [vmem:[%s1557_s7 + $0x38] sm:$0xff] %v906_v60 }
 0x1d8   :  { %v511_v61 = vpop.f32.mrf.mxu3 }
 0x1d9   :  { %v512_v62 = vadd.f32 %v1325_v35, %v511_v61 }
 0x1da   :  { %v712_v63 = vpop.f32.mrf.mxu2 }
 0x1db   :  { %v557_v0 = vmax.f32 %v512_v62, 0.0  ;;  %v713_v1 = vadd.f32 %v1393_v9, %v712_v63 }
 0x1dc   :  { %v908_v2 = vld [vmem:[#allocation3 + $0x40] sm:$0xff] }
 0x1dd   :  { %909 = vst [vmem:[%s1557_s7 + $0x40] sm:$0xff] %v908_v2  ;;  %1040 = vmatmul.msk.f32.vlgmr.msra.gmra.mxu3 %vm68_vm0, %v557_v0 }
 0x1de   :  { %791 = vst.msk [vmem:[#allocation3 + $0x48] sm:$0xff] %vm781_vm2, %v713_v1 }
 0x1e0   :  { %v514_v3 = vpop.f32.mrf.mxu3 }
 0x1e1   :  { %v515_v4 = vadd.f32 %v1325_v35, %v514_v3 }
 0x1e2   :  { %v715_v5 = vpop.f32.mrf.mxu2 }
 0x1e3   :  { %v558_v6 = vmax.f32 %v515_v4, 0.0  ;;  %v716_v7 = vadd.f32 %v1393_v9, %v715_v5 }
 0x1e5   :  { %v910_v8 = vld [vmem:[#allocation3 + $0x48] sm:$0xff]  ;;  %792 = vst.msk [vmem:[#allocation3 + $0x50] sm:$0xff] %vm781_vm2, %v716_v7  ;;  %1041 = vmatmul.msk.f32.gmra.mxu3 %vm68_vm0, %v558_v6 }
 0x1e6   :  { %911 = vst [vmem:[%s1557_s7 + $0x48] sm:$0xff] %v910_v8 }
 0x1e8   :  { %v517_v29 = vpop.f32.mrf.mxu3 }
 0x1e9   :  { %v518_v10 = vadd.f32 %v1325_v35, %v517_v29 }
 0x1ea   :  { %v718_v11 = vpop.f32.mrf.mxu2 }
 0x1eb   :  { %v559_v12 = vmax.f32 %v518_v10, 0.0  ;;  %v719_v13 = vadd.f32 %v1393_v9, %v718_v11 }
 0x1ec   :  { %v912_v14 = vld [vmem:[#allocation3 + $0x50] sm:$0xff] }
 0x1ed   :  { %913 = vst [vmem:[%s1557_s7 + $0x50] sm:$0xff] %v912_v14  ;;  %1042 = vmatmul.msk.f32.gmra.mxu3 %vm68_vm0, %v559_v12 }
 0x1ee   :  { %793 = vst.msk [vmem:[#allocation3 + $0x58] sm:$0xff] %vm781_vm2, %v719_v13 }
 0x1f0   :  { %v520_v15 = vpop.f32.mrf.mxu3 }
 0x1f1   :  { %v521_v16 = vadd.f32 %v1325_v35, %v520_v15 }
 0x1f2   :  { %v721_v17 = vpop.f32.mrf.mxu2 }
 0x1f3   :  { %v560_v18 = vmax.f32 %v521_v16, 0.0  ;;  %v722_v19 = vadd.f32 %v1393_v9, %v721_v17 }
 0x1f5   :  { %v914_v20 = vld [vmem:[#allocation3 + $0x58] sm:$0xff]  ;;  %794 = vst.msk [vmem:[#allocation3 + $0x60] sm:$0xff] %vm781_vm2, %v722_v19  ;;  %1043 = vmatmul.msk.f32.gmra.mxu3 %vm68_vm0, %v560_v18 }
 0x1f6   :  { %915 = vst [vmem:[%s1557_s7 + $0x58] sm:$0xff] %v914_v20 }
 0x1f8   :  { %v523_v21 = vpop.f32.mrf.mxu3 }
 0x1f9   :  { %v524_v22 = vadd.f32 %v1325_v35, %v523_v21 }
 0x1fa   :  { %v724_v23 = vpop.f32.mrf.mxu2 }
 0x1fb   :  { %v561_v24 = vmax.f32 %v524_v22, 0.0  ;;  %v725_v25 = vadd.f32 %v1393_v9, %v724_v23 }
 0x1fc   :  { %v916_v26 = vld [vmem:[#allocation3 + $0x60] sm:$0xff] }
 0x1fd   :  { %917 = vst [vmem:[%s1557_s7 + $0x60] sm:$0xff] %v916_v26  ;;  %1044 = vmatmul.msk.f32.gmra.mxu3 %vm68_vm0, %v561_v24 }
 0x1fe   :  { %795 = vst.msk [vmem:[#allocation3 + $0x68] sm:$0xff] %vm781_vm2, %v725_v25 }
 0x200   :  { %v526_v27 = vpop.f32.mrf.mxu3 }
 0x201   :  { %v527_v28 = vadd.f32 %v1325_v35, %v526_v27 }
 0x202   :  { %v727_v30 = vpop.f32.mrf.mxu2 }
 0x203   :  { %v562_v31 = vmax.f32 %v527_v28, 0.0  ;;  %v728_v32 = vadd.f32 %v1393_v9, %v727_v30 }
 0x205   :  { %v918_v33 = vld [vmem:[#allocation3 + $0x68] sm:$0xff]  ;;  %796 = vst.msk [vmem:[#allocation3 + $0x70] sm:$0xff] %vm781_vm2, %v728_v32  ;;  %1045 = vmatmul.msk.f32.gmra.mxu3 %vm68_vm0, %v562_v31 }
 0x206   :  { %919 = vst [vmem:[%s1557_s7 + $0x68] sm:$0xff] %v918_v33 }
 0x208   :  { %v529_v34 = vpop.f32.mrf.mxu3 }
 0x209   :  { %v530_v36 = vadd.f32 %v1325_v35, %v529_v34 }
 0x20a   :  { %v730_v37 = vpop.f32.mrf.mxu2 }
 0x20b   :  { %v563_v38 = vmax.f32 %v530_v36, 0.0  ;;  %v731_v39 = vadd.f32 %v1393_v9, %v730_v37 }
 0x20c   :  { %v920_v40 = vld [vmem:[#allocation3 + $0x70] sm:$0xff] }
 0x20d   :  { %921 = vst [vmem:[%s1557_s7 + $0x70] sm:$0xff] %v920_v40  ;;  %1046 = vmatmul.msk.f32.gmra.mxu3 %vm68_vm0, %v563_v38 }
 0x20e   :  { %797 = vst.msk [vmem:[#allocation3 + $0x78] sm:$0xff] %vm781_vm2, %v731_v39 }
 0x212   :  { %v733_v41 = vpop.f32.mrf.mxu2 }
 0x213   :  { %v734_v42 = vadd.f32 %v1393_v9, %v733_v41 }
 0x215   :  { %v922_v43 = vld [vmem:[#allocation3 + $0x78] sm:$0xff]  ;;  %798 = vst.msk [vmem:[#allocation3 + $0x80] sm:$0xff] %vm781_vm2, %v734_v42 }
 0x216   :  { %923 = vst [vmem:[%s1557_s7 + $0x78] sm:$0xff] %v922_v43 }
 0x21a   :  { %v736_v35 = vpop.f32.mrf.mxu2 }
 0x21b   :  { %v737_v44 = vadd.f32 %v1393_v9, %v736_v35 }
 0x21c   :  { %v924_v45 = vld [vmem:[#allocation3 + $0x80] sm:$0xff] }
 0x21d   :  { %925 = vst [vmem:[%s1557_s7 + $0x80] sm:$0xff] %v924_v45 }
 0x21e   :  { %799 = vst.msk [vmem:[#allocation3 + $0x88] sm:$0xff] %vm781_vm2, %v737_v44 }
 0x222   :  { %v739_v46 = vpop.f32.mrf.mxu2 }
 0x223   :  { %v740_v47 = vadd.f32 %v1393_v9, %v739_v46 }
 0x225   :  { %v926_v48 = vld [vmem:[#allocation3 + $0x88] sm:$0xff]  ;;  %800 = vst.msk [vmem:[#allocation3 + $0x90] sm:$0xff] %vm781_vm2, %v740_v47 }
 0x226   :  { %927 = vst [vmem:[%s1557_s7 + $0x88] sm:$0xff] %v926_v48 }
 0x22a   :  { %v742_v49 = vpop.f32.mrf.mxu2 }
 0x22b   :  { %v743_v50 = vadd.f32 %v1393_v9, %v742_v49 }
 0x22c   :  { %v928_v51 = vld [vmem:[#allocation3 + $0x90] sm:$0xff] }
 0x22d   :  { %929 = vst [vmem:[%s1557_s7 + $0x90] sm:$0xff] %v928_v51 }
 0x22e   :  { %801 = vst.msk [vmem:[#allocation3 + $0x98] sm:$0xff] %vm781_vm2, %v743_v50 }
 0x232   :  { %v745_v52 = vpop.f32.mrf.mxu2 }
 0x233   :  { %v746_v53 = vadd.f32 %v1393_v9, %v745_v52 }
 0x235   :  { %v930_v54 = vld [vmem:[#allocation3 + $0x98] sm:$0xff]  ;;  %802 = vst.msk [vmem:[#allocation3 + $0xa0] sm:$0xff] %vm781_vm2, %v746_v53 }
 0x236   :  { %931 = vst [vmem:[%s1557_s7 + $0x98] sm:$0xff] %v930_v54 }
 0x23a   :  { %v748_v55 = vpop.f32.mrf.mxu2 }
 0x23b   :  { %v749_v56 = vadd.f32 %v1393_v9, %v748_v55 }
 0x23c   :  { %v932_v57 = vld [vmem:[#allocation3 + $0xa0] sm:$0xff] }
 0x23d   :  { %933 = vst [vmem:[%s1557_s7 + $0xa0] sm:$0xff] %v932_v57 }
 0x23e   :  { %803 = vst.msk [vmem:[#allocation3 + $0xa8] sm:$0xff] %vm781_vm2, %v749_v56 }
 0x242   :  { %v751_v58 = vpop.f32.mrf.mxu2 }
 0x243   :  { %v752_v59 = vadd.f32 %v1393_v9, %v751_v58 }
 0x245   :  { %v934_v60 = vld [vmem:[#allocation3 + $0xa8] sm:$0xff]  ;;  %804 = vst.msk [vmem:[#allocation3 + $0xb0] sm:$0xff] %vm781_vm2, %v752_v59 }
 0x246   :  { %935 = vst [vmem:[%s1557_s7 + $0xa8] sm:$0xff] %v934_v60 }
 0x24a   :  { %v754_v61 = vpop.f32.mrf.mxu2 }
 0x24b   :  { %v755_v62 = vadd.f32 %v1393_v9, %v754_v61 }
 0x24c   :  { %v936_v63 = vld [vmem:[#allocation3 + $0xb0] sm:$0xff] }
 0x24d   :  { %937 = vst [vmem:[%s1557_s7 + $0xb0] sm:$0xff] %v936_v63 }
 0x24e   :  { %805 = vst.msk [vmem:[#allocation3 + $0xb8] sm:$0xff] %vm781_vm2, %v755_v62 }
 0x255   :  { %v938_v0 = vld [vmem:[#allocation3 + $0xb8] sm:$0xff] }
 0x256   :  { %939 = vst [vmem:[%s1557_s7 + $0xb8] sm:$0xff] %v938_v0 }
 0x258   :  { %v757_v1 = vpop.f32.mrf.mxu2 }
 0x259   :  { %v758_v2 = vadd.f32 %v1393_v9, %v757_v1 }
 0x25b   :  { %806 = vst.msk [vmem:[#allocation3 + $0xc0] sm:$0xff] %vm781_vm2, %v758_v2 }
 0x260   :  { %v760_v3 = vpop.f32.mrf.mxu3 }
 0x262   :  { %v940_v4 = vld [vmem:[#allocation3 + $0xc0] sm:$0xff] }
 0x263   :  { %941 = vst [vmem:[%s1557_s7 + $0xc0] sm:$0xff] %v940_v4 }
 0x268   :  { %v763_v5 = vpop.f32.mrf.mxu3 }
 0x270   :  { %v766_v6 = vpop.f32.mrf.mxu3 }
 0x278   :  { %v769_v7 = vpop.f32.mrf.mxu3 }
 0x280   :  { %v772_v8 = vpop.f32.mrf.mxu3 }
 0x288   :  { %v775_v29 = vpop.f32.mrf.mxu3 }
 0x290   :  { %v778_v10 = vpop.f32.mrf.mxu3 }

</bundles_post_ra>
